<compile_context>
chip_gen: v6e
topology: v6e:2x2x1
jax: 0.10.0
libtpu: 0.0.40
codegen_flags: <defaults>
</compile_context>

<pallas_src>
import functools

import jax
import jax.numpy as jnp
import numpy as np
from jax import lax
from jax.experimental import pallas as pl
from jax.experimental.pallas import tpu as pltpu

A_COEF = 1.0
B_COEF = 0.001


def drslx_kernel(pred_ref, labels_ref, out_ref, *, n_true, c_true, block_n):
    """Per-block partial sums of CE numerator and negative-logit spread."""
    i = pl.program_id(0)

    pred = pred_ref[...].astype(jnp.float32)      # (bn, C)
    labels = labels_ref[...]                      # (bn, 1) int32
    bn, c = pred.shape

    col = lax.broadcasted_iota(jnp.int32, (bn, c), 1)
    row = lax.broadcasted_iota(jnp.int32, (bn, 1), 0)
    row_valid = (i * block_n + row) < n_true       # mask out-of-range batch rows
    is_label = col == labels                       # one True per valid row

    # Shifted logits: CE uses them directly; the spread term is shift-invariant.
    row_max = jnp.max(pred, axis=1, keepdims=True)            # (bn,1)
    t = pred - row_max                                         # (bn,C)
    sum_exp = jnp.sum(jnp.exp(t), axis=1, keepdims=True)       # (bn,1)
    sum_t = jnp.sum(t, axis=1, keepdims=True)
    sum_t2 = jnp.sum(t * t, axis=1, keepdims=True)
    t_lab = jnp.sum(jnp.where(is_label, t, 0.0), axis=1, keepdims=True)

    # Cross-entropy numerator per row: logsumexp(pred) - pred[label]
    ce_row = jnp.log(sum_exp) - t_lab                          # (bn,1)

    # Spread of non-label logits around their mean, fused algebraically:
    #   sum_{j!=lab}(t_j - m)^2 = (sum_t2 - t_lab^2) - (sum_t - t_lab)^2/(C-1)
    inv_cm1 = 1.0 / float(c_true - 1)                          # Python literal
    sum_neg = sum_t - t_lab
    neg_row = (sum_t2 - t_lab * t_lab) - sum_neg * sum_neg * inv_cm1

    ce_part = jnp.sum(jnp.where(row_valid, ce_row, 0.0))
    neg_part = jnp.sum(jnp.where(row_valid, neg_row, 0.0))

    # Lane-dense per-block output: sublane 0 = CE partial, sublane 1 = spread.
    sub = lax.broadcasted_iota(jnp.int32, (8, 128), 0)
    tile = jnp.where(sub == 0, ce_part, jnp.where(sub == 1, neg_part, 0.0))
    out_ref[0, :, :] = tile.astype(jnp.float32)


def drslx_loss(pred, labels, *, a=A_COEF, b=B_COEF, block_n=None):
    """pred: [N, C] float logits, labels: [N] int class ids -> scalar loss."""
    N, C = pred.shape
    assert C >= 2, "need at least 2 classes for the negative-logit spread term"

    itemsize = jnp.dtype(pred.dtype).itemsize
    # Packed-sublane multiple: 8 for 4-byte, 16 for 2-byte, 32 for 1-byte dtypes.
    sub_mult = max(8, 32 // itemsize)

    if block_n is None:
        target_bytes = 8 * 1024 * 1024                       # ~8 MiB of pred / block
        bn = max(sub_mult,
                 (target_bytes // max(C * itemsize, 1)) // sub_mult * sub_mult)
    else:
        bn = max(sub_mult, (int(block_n) // sub_mult) * sub_mult)
    # Don't over-pad tiny batches.
    bn = min(bn, pl.cdiv(N, sub_mult) * sub_mult)
    # v7x megacore: prefer >= 2 blocks so the parallel batch axis spans both TCs.
    while pl.cdiv(N, bn) < 2 and bn >= 2 * sub_mult:
        bn = max(sub_mult, (bn // 2) // sub_mult * sub_mult)
    num_blocks = pl.cdiv(N, bn)

    labels2 = labels.astype(jnp.int32).reshape(N, 1)

    # VMEM budget: double-buffered pred + labels blocks, output tile + headroom.
    pred_blk = bn * pl.cdiv(C, 128) * 128 * itemsize
    lab_blk = bn * 128 * 4                    # (bn,1) int32 pads to 128 lanes
    out_blk = 8 * 128 * 4
    vmem_limit = int(min(2 * (pred_blk + lab_blk + out_blk) + (2 << 20), 48 << 20))

    partials = pl.pallas_call(
        functools.partial(drslx_kernel, n_true=N, c_true=C, block_n=bn),
        out_shape=jax.ShapeDtypeStruct((num_blocks, 8, 128), jnp.float32),
        grid=(num_blocks,),
        in_specs=[
            pl.BlockSpec((bn, C), lambda i: (i, 0)),   # full class width: no pad
            pl.BlockSpec((bn, 1), lambda i: (i, 0)),
        ],
        out_specs=pl.BlockSpec((1, 8, 128), lambda i: (i, 0, 0)),
        compiler_params=pltpu.CompilerParams(
            dimension_semantics=("parallel",),
            vmem_limit_bytes=vmem_limit,
        ),
    )(pred, labels2)

    ce_total = jnp.sum(partials[:, 0, 0])
    neg_total = jnp.sum(partials[:, 1, 0])
    return a * (ce_total / N) + b * neg_total


def drslx_ref(pred, labels, *, a=A_COEF, b=B_COEF):
    """Pure-JAX reference mirroring the PyTorch module semantics."""
    N, C = pred.shape
    logp = jax.nn.log_softmax(pred.astype(jnp.float32), axis=1)
    ce = -jnp.mean(logp[jnp.arange(N), labels])
    mask = jnp.arange(C)[None, :] != labels[:, None]          # True for negatives
    label_logit = pred[jnp.arange(N), labels].astype(jnp.float32)
    neg_mean = (jnp.sum(pred.astype(jnp.float32), axis=1) - label_logit) / (C - 1)
    diff = jnp.where(mask, pred.astype(jnp.float32) - neg_mean[:, None], 0.0)
    neg_loss = jnp.sum(diff * diff)
    return a * ce + b * neg_loss


if __name__ == "__main__":
    key = jax.random.PRNGKey(0)
    k1, k2, k3, k4 = jax.random.split(key, 4)

    # Case 1: small aligned-ish shape (matches the original test).
    N, C = 8, 32
    pred = jax.random.normal(k1, (N, C), dtype=jnp.float32)
    labels = jax.random.randint(k2, (N,), 0, C, dtype=jnp.int32)
    loss = drslx_loss(pred, labels)
    jax.block_until_ready(loss)
    np.testing.assert_allclose(np.asarray(loss), np.asarray(drslx_ref(pred, labels)),
                               rtol=1e-5, atol=1e-5)

    # Case 2: unaligned N/C + multi-block grid (exercises the no-pad path,
    # out-of-bounds last block masking, and parallel per-block partials).
    N2, C2 = 20, 37
    pred2 = jax.random.normal(k3, (N2, C2), dtype=jnp.float32)
    labels2 = jax.random.randint(k4, (N2,), 0, C2, dtype=jnp.int32)
    loss2 = drslx_loss(pred2, labels2, block_n=8)   # forces 3 grid blocks
    jax.block_until_ready(loss2)
    np.testing.assert_allclose(np.asarray(loss2), np.asarray(drslx_ref(pred2, labels2)),
                               rtol=1e-5, atol=1e-5)

    # Case 3: bf16 logits streamed without a wrapper upcast (kernel casts per tile).
    pred3 = pred2.astype(jnp.bfloat16)
    loss3 = drslx_loss(pred3, labels2)
    jax.block_until_ready(loss3)
    np.testing.assert_allclose(np.asarray(loss3), np.asarray(drslx_ref(pred3, labels2)),
                               rtol=1e-4, atol=1e-4)

    print("KERNEL_OK")
</pallas_src>

<mosaic_0001>
module attributes {stable_mosaic.version = 11 : i64} {
  func.func @drslx_kernel(%arg0: i32, %arg1: memref<8x32xf32, #tpu.memory_space<vmem>>, %arg2: memref<8x1xi32, #tpu.memory_space<vmem>>, %arg3: memref<1x8x128xf32, #tpu.memory_space<vmem>>) attributes {dimension_semantics = [#tpu.dimension_semantics<parallel>], iteration_bounds = array<i64: 1>, scalar_prefetch = 0 : i64, scratch_operands = 0 : i64, tpu.core_type = #tpu.core_type<tc>, window_params = [{transform_indices = @transform_0, window_bounds = array<i64: 8, 32>}, {transform_indices = @transform_1, window_bounds = array<i64: 8, 1>}, {transform_indices = @transform_2, window_bounds = array<i64: 1, 8, 128>}]} {
    %c0 = arith.constant 0 : index
    %c0_0 = arith.constant 0 : index
    %0 = vector.load %arg1[%c0, %c0_0] : memref<8x32xf32, #tpu.memory_space<vmem>>, vector<8x32xf32>
    %c0_1 = arith.constant 0 : index
    %c0_2 = arith.constant 0 : index
    %1 = vector.load %arg2[%c0_1, %c0_2] : memref<8x1xi32, #tpu.memory_space<vmem>>, vector<8x1xi32>
    %2 = tpu.iota {dimensions = array<i32: 1>} : vector<8x32xi32>
    %3 = tpu.iota {dimensions = array<i32: 0>} : vector<8x1xi32>
    %c8_i32 = arith.constant 8 : i32
    %4 = arith.muli %arg0, %c8_i32 : i32
    %5 = vector.broadcast %4 : i32 to vector<8x1xi32>
    %6 = arith.addi %5, %3 : vector<8x1xi32>
    %c8_i32_3 = arith.constant 8 : i32
    %7 = vector.broadcast %c8_i32_3 : i32 to vector<8x1xi32>
    %8 = arith.cmpi slt, %6, %7 : vector<8x1xi32>
    %9 = vector.broadcast %1 : vector<8x1xi32> to vector<8x32xi32>
    %10 = arith.cmpi eq, %2, %9 : vector<8x32xi32>
    %cst = arith.constant dense<0xFF800000> : vector<8xf32>
    %11 = vector.multi_reduction <maximumf>, %0, %cst [1] : vector<8x32xf32> to vector<8xf32>
    %12 = vector.shape_cast %11 : vector<8xf32> to vector<8x1xf32>
    %13 = vector.broadcast %12 : vector<8x1xf32> to vector<8x32xf32>
    %14 = arith.subf %0, %13 : vector<8x32xf32>
    %15 = math.exp %14 : vector<8x32xf32>
    %cst_4 = arith.constant dense<0.000000e+00> : vector<8xf32>
    %16 = vector.multi_reduction <add>, %15, %cst_4 [1] : vector<8x32xf32> to vector<8xf32>
    %17 = vector.shape_cast %16 : vector<8xf32> to vector<8x1xf32>
    %cst_5 = arith.constant dense<0.000000e+00> : vector<8xf32>
    %18 = vector.multi_reduction <add>, %14, %cst_5 [1] : vector<8x32xf32> to vector<8xf32>
    %19 = vector.shape_cast %18 : vector<8xf32> to vector<8x1xf32>
    %20 = arith.mulf %14, %14 : vector<8x32xf32>
    %cst_6 = arith.constant dense<0.000000e+00> : vector<8xf32>
    %21 = vector.multi_reduction <add>, %20, %cst_6 [1] : vector<8x32xf32> to vector<8xf32>
    %22 = vector.shape_cast %21 : vector<8xf32> to vector<8x1xf32>
    %cst_7 = arith.constant 0.000000e+00 : f32
    %23 = vector.broadcast %cst_7 : f32 to vector<8x32xf32>
    %24 = arith.select %10, %14, %23 : vector<8x32xi1>, vector<8x32xf32>
    %cst_8 = arith.constant dense<0.000000e+00> : vector<8xf32>
    %25 = vector.multi_reduction <add>, %24, %cst_8 [1] : vector<8x32xf32> to vector<8xf32>
    %26 = vector.shape_cast %25 : vector<8xf32> to vector<8x1xf32>
    %27 = math.log %17 : vector<8x1xf32>
    %28 = arith.subf %27, %26 : vector<8x1xf32>
    %29 = arith.subf %19, %26 : vector<8x1xf32>
    %30 = arith.mulf %26, %26 : vector<8x1xf32>
    %31 = arith.subf %22, %30 : vector<8x1xf32>
    %32 = arith.mulf %29, %29 : vector<8x1xf32>
    %cst_9 = arith.constant 0.0322580636 : f32
    %33 = vector.broadcast %cst_9 : f32 to vector<8x1xf32>
    %34 = arith.mulf %32, %33 : vector<8x1xf32>
    %35 = arith.subf %31, %34 : vector<8x1xf32>
    %cst_10 = arith.constant 0.000000e+00 : f32
    %36 = vector.broadcast %cst_10 : f32 to vector<8x1xf32>
    %37 = arith.select %8, %28, %36 : vector<8x1xi1>, vector<8x1xf32>
    %38 = vector.shape_cast %37 : vector<8x1xf32> to vector<1x8x1xf32>
    %cst_11 = arith.constant dense<0.000000e+00> : vector<1xf32>
    %39 = vector.multi_reduction <add>, %38, %cst_11 [1, 2] : vector<1x8x1xf32> to vector<1xf32>
    %40 = vector.shape_cast %39 : vector<1xf32> to vector<1x1x1xf32>
    %41 = vector.extract %40[0, 0, 0] : f32 from vector<1x1x1xf32>
    %cst_12 = arith.constant 0.000000e+00 : f32
    %42 = vector.broadcast %cst_12 : f32 to vector<8x1xf32>
    %43 = arith.select %8, %35, %42 : vector<8x1xi1>, vector<8x1xf32>
    %44 = vector.shape_cast %43 : vector<8x1xf32> to vector<1x8x1xf32>
    %cst_13 = arith.constant dense<0.000000e+00> : vector<1xf32>
    %45 = vector.multi_reduction <add>, %44, %cst_13 [1, 2] : vector<1x8x1xf32> to vector<1xf32>
    %46 = vector.shape_cast %45 : vector<1xf32> to vector<1x1x1xf32>
    %47 = vector.extract %46[0, 0, 0] : f32 from vector<1x1x1xf32>
    %48 = tpu.iota {dimensions = array<i32: 0>} : vector<8x128xi32>
    %c0_i32 = arith.constant 0 : i32
    %49 = vector.broadcast %c0_i32 : i32 to vector<8x128xi32>
    %50 = arith.cmpi eq, %48, %49 : vector<8x128xi32>
    %c1_i32 = arith.constant 1 : i32
    %51 = vector.broadcast %c1_i32 : i32 to vector<8x128xi32>
    %52 = arith.cmpi eq, %48, %51 : vector<8x128xi32>
    %cst_14 = arith.constant 0.000000e+00 : f32
    %53 = vector.broadcast %47 : f32 to vector<8x128xf32>
    %54 = vector.broadcast %cst_14 : f32 to vector<8x128xf32>
    %55 = arith.select %52, %53, %54 : vector<8x128xi1>, vector<8x128xf32>
    %56 = vector.broadcast %41 : f32 to vector<8x128xf32>
    %57 = arith.select %50, %56, %55 : vector<8x128xi1>, vector<8x128xf32>
    %c0_15 = arith.constant 0 : index
    %c0_16 = arith.constant 0 : index
    %c0_17 = arith.constant 0 : index
    %58 = vector.load %arg3[%c0_15, %c0_16, %c0_17] : memref<1x8x128xf32, #tpu.memory_space<vmem>>, vector<1x8x128xf32>
    %59 = vector.shape_cast %58 : vector<1x8x128xf32> to vector<8x128xf32>
    %60 = vector.shape_cast %57 : vector<8x128xf32> to vector<1x8x128xf32>
    tpu.vector_store %arg3[%c0_15, %c0_16, %c0_17], %60 {strides = array<i32>} : memref<1x8x128xf32, #tpu.memory_space<vmem>>, vector<1x8x128xf32>,
    return
  }
  func.func @transform_0(%arg0: i32) -> (i32, i32) {
    %c0_i32 = arith.constant 0 : i32
    %c0_i32_0 = arith.constant 0 : i32
    return %arg0, %c0_i32 : i32, i32
  }
  func.func @transform_1(%arg0: i32) -> (i32, i32) {
    %c0_i32 = arith.constant 0 : i32
    %c0_i32_0 = arith.constant 0 : i32
    return %arg0, %c0_i32 : i32, i32
  }
  func.func @transform_2(%arg0: i32) -> (i32, i32, i32) {
    %c0_i32 = arith.constant 0 : i32
    %c0_i32_0 = arith.constant 0 : i32
    %c0_i32_1 = arith.constant 0 : i32
    return %arg0, %c0_i32, %c0_i32_0 : i32, i32, i32
  }
}

</mosaic_0001>

<bundles_post_ra>
// kernel: tpu_custom_call.1
= control target key start
LH: loop header
LB: loop body
LE: loop exit
PB: predicated region body
PF: predicated region fallthrough
CT: control target
= control target key end

     0   :  { %vm26_vm0 = vcmask 261120   ;;  %s164_s0 = inlined_call_operand.vmem [shape: f32[8,32], index: 0, kind: input, shape index: {}]   ;;  %s165_s1 = inlined_call_operand.vmem [shape: s32[8,1], index: 1, kind: input, shape index: {}]   ;;  %s166_s2 = inlined_call_operand.hbm [shape: f32[1,8,128], index: 2, kind: output, shape index: {}]  }
   0x1   :  { %v12_v0 = vld [vmem:[%s164_s0] sm:$0xff] }
   0x2   :  { %7 = vsyncpa [#allocation3], 0  ;;  %v27_v1 = vsel %vm26_vm0, %v12_v0, -inf  ;;  %v133_v2 = vmov 0   ;;  %v13_v3 = vld [vmem:[%s165_s1] sm:$0xff]  ;;  %v14_v7 = vlaneseq  ;;  %vm57_vm2 = vcmask 7168  }
   0x3   :  { %106 = vset.pattern.permute.xlu0 %v133_v2  ;;  %s134_s1 = smov [#allocation2]  }
   0x4   :  { %28 = vmax.xlane.f32.xlu0 %v27_v1  ;;  %v15_v8 = vand.u32 127, %v14_v7  ;;  %v17_v46 = vshrl.u32 %v14_v7, 7  ;;  %s92_s13 = sshll.u32 %s134_s1, 4  ;;  %s93_s13 = int_to_ptr.vmem [resolvable:$true] %s92_s13 }
   0x5   :  { %s111_s15 = scalar_lea.vmem %s93_s13, 128  ;;  %p116_p1 = scmp.lt.s32.totalorder %s93_s13, %s93_s13 }
   0x6   :  { %vm80_vm3 = vcmp.eq.s32.totalorder %v17_v46, 1  ;;  %vm79_vm4 = vcmp.eq.s32.totalorder %v17_v46, 0  ;;  %p112_p0 = scmp.ne.s32.totalorder %s93_s13, %s111_s15  ;;  %p117_p2 = scmp.lt.s32.totalorder %s111_s15, %s111_s15 }
   0x8   :  { %p118_p3 = por %p117_p2, %p116_p1 }
   0xa   :  { %p119_p4 = pnand %p118_p3, %p112_p0 }
  0x1a   :  { %23 = vperm.xlu0 %106, %v13_v3  }
  0x8d   :  { %v29_v4 = vpop.xlane.xlu0 %28 }
  0x8e   :  { %v30_v5 = vsub.f32 %v12_v0, %v29_v4 }
  0x90   :  { %v31_v6 = vmul.f32 1.442695, %v30_v5  ;;  %v36_v12 = vsel %vm26_vm0, %v30_v5, 0.0  ;;  %v39_v15 = vmul.f32 %v30_v5, %v30_v5 }
  0x92   :  { %107 = vpow2.f32 %v31_v6  ;;  %v40_v16 = vsel %vm26_vm0, %v39_v15, 0.0 }
  0x95   :  { %v24_v10 = vpop.permute.xlu0 %23 }
  0x96   :  { %vm25_vm1 = vcmp.eq.s32.totalorder %v15_v8, %v24_v10 }
  0x97   :  { %v43_v13 = vsel %vm25_vm1, %v30_v5, 0.0 }
  0x98   :  { %v44_v14 = vsel %vm26_vm0, %v43_v13, 0.0 }
  0x9f   :  { %v108_v9 = vpop.eup %107 }
  0xa0   :  { %v33_v11 = vsel %vm26_vm0, %v108_v9, 0.0 }
  0xa1   :  { %34 = vadd.xlane.f32.xlu1 %v33_v11 }
  0xa5   :  { %37 = vadd.xlane.f32.xlu1 %v36_v12 }
  0xa9   :  { %45 = vadd.xlane.f32.xlu1 %v44_v14 }
  0xad   :  { %41 = vadd.xlane.f32.xlu1 %v40_v16 }
 0x12a   :  { %v35_v17 = vpop.xlane.xlu1 %34 }
 0x12b   :  { %109 = vlog2.f32 %v35_v17 }
 0x12e   :  { %v38_v18 = vpop.xlane.xlu1 %37 }
 0x132   :  { %v46_v19 = vpop.xlane.xlu1 %45 }
 0x133   :  { %v50_v20 = vsub.f32 %v38_v18, %v46_v19  ;;  %v51_v23 = vmul.f32 %v46_v19, %v46_v19 }
 0x135   :  { %v53_v21 = vmul.f32 %v50_v20, %v50_v20 }
 0x136   :  { %v42_v22 = vpop.xlane.xlu1 %41 }
 0x137   :  { %v52_v26 = vsub.f32 %v42_v22, %v51_v23  ;;  %v54_v27 = vmul.f32 0.032258064, %v53_v21 }
 0x138   :  { %v110_v24 = vpop.eup %109 }
 0x139   :  { %v48_v25 = vmul.f32 0.6931472, %v110_v24  ;;  %v55_v30 = vsub.f32 %v52_v26, %v54_v27 }
 0x13b   :  { %v49_v28 = vsub.f32 %v48_v25, %v46_v19  ;;  %v69_v31 = vsel %vm57_vm2, %v55_v30, 0.0 }
 0x13d   :  { %v58_v29 = vsel %vm57_vm2, %v49_v28, 0.0 }
 0x13e   :  { %59 = vadd.xlane.f32.xlu1 %v58_v29 }
 0x142   :  { %70 = vadd.xlane.f32.xlu1 %v69_v31 }
 0x1c7   :  { %v60_v32 = vpop.xlane.xlu1 %59 }
 0x1c8   :  { %v61_v33 = vrot.slane %v60_v32, 4 }
 0x1ca   :  { %v62_v34 = vadd.f32 %v61_v33, %v60_v32 }
 0x1cb   :  { %v71_v35 = vpop.xlane.xlu1 %70 }
 0x1cc   :  { %v63_v36 = vrot.slane %v62_v34, 2  ;;  %v72_v37 = vrot.slane %v71_v35, 4 }
 0x1ce   :  { %v73_v38 = vadd.f32 %v72_v37, %v71_v35  ;;  %v64_v39 = vadd.f32 %v63_v36, %v62_v34 }
 0x1d0   :  { %v74_v40 = vrot.slane %v73_v38, 2  ;;  %v65_v41 = vrot.slane %v64_v39, 1 }
 0x1d2   :  { %v75_v42 = vadd.f32 %v74_v40, %v73_v38  ;;  %v66_v43 = vadd.f32 %v65_v41, %v64_v39 }
 0x1d4   :  { %100 = vpush %v66_v43  ;;  %v76_v44 = vrot.slane %v75_v42, 1 }
 0x1d6   :  { %v77_v45 = vadd.f32 %v76_v44, %v75_v42 }
 0x1d8   :  { %102 = vpush %v77_v45 }
 0x205   :  { %s101_s0 = spop %100 }
 0x206   :  { %v83_v48 = vstv %s101_s0 }
 0x209   :  { %s103_s14 = spop %102 }
 0x20a   :  { %v81_v47 = vstv %s103_s14 }
 0x20b   :  { %v82_v49 = vsel %vm80_vm3, %v81_v47, 0.0 }
 0x20c   :  { %v84_v50 = vsel %vm79_vm4, %v83_v48, %v82_v49 }
 0x20d   :  { %85 = vst [vmem:[#allocation2] sm:$0xff] %v84_v50 }
 0x20e   :  { %122 = shalt.err (!%p119_p4)
}
 0x20f   :  { %95 = dma.vmem_to_hbm [thread:$0]  %s93_s13, 128, %s166_s2, [#allocation3]  }
 0x210   :  { %131 = dma.done.wait [#allocation3], 128  }
 0x211   :  { %132 = vsyncadd [#allocation3], 4294967168 }
 0x212   :  { %99 = vsyncpa [#allocation3], 1 }

</bundles_post_ra>
